<compile_context>
chip_gen: v5e
topology: v5e:2x2
jax: 0.10.0
libtpu: 0.0.40
codegen_flags: <defaults>
</compile_context>

<pallas_src>
import functools
import math

import jax
import jax.numpy as jnp
from jax.experimental import pallas as pl
from jax.experimental.pallas import tpu as pltpu


def _mlp_vae_kernel(E, O, h_ref, w_enc_ref, b_enc_ref, wd_ref, bd_ref,
                    eps_ref, out_ref):
    # Fused encoder: one MXU matmul producing [mu | logstd] -> (TB, 2E), f32 acc.
    h_bf = h_ref[...].astype(jnp.bfloat16)
    enc = jnp.dot(h_bf, w_enc_ref[...],
                  preferred_element_type=jnp.float32) + b_enc_ref[...]
    mu = enc[:, :E]
    logstd = enc[:, E:]

    # Reparameterize in f32 (eval mode handled by eps == 0 -> z == mu exactly).
    z = mu + eps_ref[...] * jnp.exp(0.5 * logstd)

    # Decoder Linear + Sigmoid: bf16 operands on the MXU, f32 elsewhere.
    logits = jnp.dot(z.astype(jnp.bfloat16), wd_ref[...],
                     preferred_element_type=jnp.float32) + bd_ref[...]
    # sigmoid(x) = 1 / (1 + exp(-x)); approx reciprocal issues on the EUP slot.
    adj = pl.reciprocal(1.0 + jnp.exp(-logits), approx=True)

    # Single lane-dense output slab: [adj | mu | logstd]. enc already holds
    # mu|logstd contiguously, so only one 2-way lane concat is needed.
    out_ref[...] = jnp.concatenate([adj, enc], axis=-1)


def mlp_vae_forward(h, params, eps, *, batch_tile=256):
    """Whole VAE forward in one Pallas call, batch-tiled over a parallel grid."""
    B, D_in = h.shape
    two_e = params["w_enc"].shape[1]
    E = two_e // 2
    O = params["wd"].shape[1]

    # Pad batch to a sublane multiple; pick the largest tile that fits nicely.
    Bp = max(8, pl.cdiv(B, 8) * 8)
    if Bp <= batch_tile:
        tb = Bp
    else:
        Bp = pl.cdiv(Bp, batch_tile) * batch_tile
        tb = batch_tile
    if Bp != B:
        pad = Bp - B
        h = jnp.pad(h, ((0, pad), (0, 0)))
        eps = jnp.pad(eps, ((0, pad), (0, 0)))

    grid = (Bp // tb,)
    kernel = functools.partial(_mlp_vae_kernel, E, O)

    flops = 2 * Bp * D_in * two_e + 2 * Bp * E * O
    bytes_accessed = (
        Bp * D_in * 4
        + params["w_enc"].size * 2 + params["b_enc"].size * 4
        + params["wd"].size * 2 + params["bd"].size * 4
        + Bp * E * 4 + Bp * (O + two_e) * 4)

    out = pl.pallas_call(
        kernel,
        grid=grid,
        out_shape=jax.ShapeDtypeStruct((Bp, O + two_e), jnp.float32),
        in_specs=[
            pl.BlockSpec((tb, D_in), lambda i: (i, 0)),        # h (batch-tiled)
            pl.BlockSpec((D_in, two_e), lambda i: (0, 0)),     # packed enc W
            pl.BlockSpec((1, two_e), lambda i: (0, 0)),        # packed enc b
            pl.BlockSpec((E, O), lambda i: (0, 0)),            # decoder W
            pl.BlockSpec((1, O), lambda i: (0, 0)),            # decoder b
            pl.BlockSpec((tb, E), lambda i: (i, 0)),           # eps (batch-tiled)
        ],
        out_specs=pl.BlockSpec((tb, O + two_e), lambda i: (i, 0)),
        compiler_params=pltpu.CompilerParams(
            dimension_semantics=("parallel",)),
        cost_estimate=pl.CostEstimate(
            flops=flops,
            transcendentals=Bp * (E + O),
            bytes_accessed=bytes_accessed),
    )(h, params["w_enc"], params["b_enc"], params["wd"], params["bd"], eps)

    out = out[:B]
    adj = out[:, :O]
    mu = out[:, O:O + E]
    logstd = out[:, O + E:]
    return adj, mu, logstd


def init_params(key, input_size, embedding_size, output_size):
    """Matches PyTorch init: xavier_uniform_(weight, gain=calc_gain('relu')),
    default U(-1/sqrt(fan_in), 1/sqrt(fan_in)) biases. Weights are stored
    pre-transposed as (in, out), packed [Wmu|Wls], and cast to bf16 for the MXU."""
    gain = math.sqrt(2.0)  # calculate_gain('relu')

    def xavier(k, fan_in, fan_out):
        bound = gain * math.sqrt(6.0 / (fan_in + fan_out))
        return jax.random.uniform(k, (fan_in, fan_out), jnp.float32, -bound, bound)

    def bias(k, fan_in, fan_out):
        bound = 1.0 / math.sqrt(fan_in)
        return jax.random.uniform(k, (1, fan_out), jnp.float32, -bound, bound)

    k = jax.random.split(key, 6)
    wmu = xavier(k[0], input_size, embedding_size)
    bmu = bias(k[1], input_size, embedding_size)
    wls = xavier(k[2], input_size, embedding_size)
    bls = bias(k[3], input_size, embedding_size)
    wd = xavier(k[4], embedding_size, output_size)
    bd = bias(k[5], embedding_size, output_size)

    return {
        "w_enc": jnp.concatenate([wmu, wls], axis=1).astype(jnp.bfloat16),
        "b_enc": jnp.concatenate([bmu, bls], axis=1),          # f32
        "wd": wd.astype(jnp.bfloat16),
        "bd": bd,                                              # f32
    }


if __name__ == "__main__":
    input_size, embedding_size, output_size = 32, 16, 32
    batch = 8

    key = jax.random.PRNGKey(0)
    k_param, k_h, k_eps = jax.random.split(key, 3)

    params = init_params(k_param, input_size, embedding_size, output_size)
    h = jax.random.normal(k_h, (batch, input_size), jnp.float32)

    # training mode (PyTorch default): eps ~ N(0, 1); eval would pass zeros.
    training = True
    eps = (jax.random.normal(k_eps, (batch, embedding_size), jnp.float32)
           if training else jnp.zeros((batch, embedding_size), jnp.float32))

    adj_recon, mu, logstd = mlp_vae_forward(h, params, eps)
    jax.block_until_ready((adj_recon, mu, logstd))

    # Pure-JAX reference mirroring the kernel's bf16 operand quantization.
    h_q = h.astype(jnp.bfloat16).astype(jnp.float32)
    w_enc_f = params["w_enc"].astype(jnp.float32)
    wd_f = params["wd"].astype(jnp.float32)
    enc_ref = h_q @ w_enc_f + params["b_enc"]
    mu_ref = enc_ref[:, :embedding_size]
    ls_ref = enc_ref[:, embedding_size:]
    z_ref = mu_ref + eps * jnp.exp(0.5 * ls_ref)
    z_q = z_ref.astype(jnp.bfloat16).astype(jnp.float32)
    adj_ref = jax.nn.sigmoid(z_q @ wd_f + params["bd"])

    assert jnp.allclose(mu, mu_ref, atol=2e-3), float(jnp.max(jnp.abs(mu - mu_ref)))
    assert jnp.allclose(logstd, ls_ref, atol=2e-3), float(jnp.max(jnp.abs(logstd - ls_ref)))
    assert jnp.allclose(adj_recon, adj_ref, atol=1e-2), float(jnp.max(jnp.abs(adj_recon - adj_ref)))

    print("KERNEL_OK")
</pallas_src>

<mosaic_0001>
module attributes {stable_mosaic.version = 11 : i64} {
  func.func @_mlp_vae_kernel(%arg0: i32, %arg1: memref<8x32xf32, #tpu.memory_space<vmem>>, %arg2: memref<32x32xbf16, #tpu.memory_space<vmem>>, %arg3: memref<1x32xf32, #tpu.memory_space<vmem>>, %arg4: memref<16x32xbf16, #tpu.memory_space<vmem>>, %arg5: memref<1x32xf32, #tpu.memory_space<vmem>>, %arg6: memref<8x16xf32, #tpu.memory_space<vmem>>, %arg7: memref<8x64xf32, #tpu.memory_space<vmem>>) attributes {dimension_semantics = [#tpu.dimension_semantics<parallel>], iteration_bounds = array<i64: 1>, scalar_prefetch = 0 : i64, scratch_operands = 0 : i64, tpu.core_type = #tpu.core_type<tc>, window_params = [{transform_indices = @transform_0, window_bounds = array<i64: 8, 32>}, {pipeline_mode = #tpu.pipeline_mode<synchronous>, transform_indices = @transform_1, window_bounds = array<i64: 32, 32>}, {pipeline_mode = #tpu.pipeline_mode<synchronous>, transform_indices = @transform_2, window_bounds = array<i64: 1, 32>}, {pipeline_mode = #tpu.pipeline_mode<synchronous>, transform_indices = @transform_3, window_bounds = array<i64: 16, 32>}, {pipeline_mode = #tpu.pipeline_mode<synchronous>, transform_indices = @transform_4, window_bounds = array<i64: 1, 32>}, {transform_indices = @transform_5, window_bounds = array<i64: 8, 16>}, {transform_indices = @transform_6, window_bounds = array<i64: 8, 64>}]} {
    %c0 = arith.constant 0 : index
    %c0_0 = arith.constant 0 : index
    %0 = vector.load %arg1[%c0, %c0_0] : memref<8x32xf32, #tpu.memory_space<vmem>>, vector<8x32xf32>
    %1 = arith.truncf %0 : vector<8x32xf32> to vector<8x32xbf16>
    %c0_1 = arith.constant 0 : index
    %c0_2 = arith.constant 0 : index
    %2 = vector.load %arg2[%c0_1, %c0_2] : memref<32x32xbf16, #tpu.memory_space<vmem>>, vector<32x32xbf16>
    %cst = arith.constant dense<0.000000e+00> : vector<8x32xf32>
    %3 = tpu.matmul %1, %2, %cst {dimension_numbers = #tpu.dot_dimension_numbers<[1], [0], [0], [1], [0, 0, 1, 1], [], []>} : vector<8x32xbf16>, vector<32x32xbf16>, vector<8x32xf32> -> vector<8x32xf32>
    %c0_3 = arith.constant 0 : index
    %c0_4 = arith.constant 0 : index
    %4 = vector.load %arg3[%c0_3, %c0_4] : memref<1x32xf32, #tpu.memory_space<vmem>>, vector<1x32xf32>
    %5 = vector.broadcast %4 : vector<1x32xf32> to vector<8x32xf32>
    %6 = arith.addf %3, %5 : vector<8x32xf32>
    %7 = vector.extract_strided_slice %6 {offsets = [0, 0], sizes = [8, 16], strides = [1, 1]} : vector<8x32xf32> to vector<8x16xf32>
    %8 = vector.extract_strided_slice %6 {offsets = [0, 16], sizes = [8, 16], strides = [1, 1]} : vector<8x32xf32> to vector<8x16xf32>
    %c0_5 = arith.constant 0 : index
    %c0_6 = arith.constant 0 : index
    %9 = vector.load %arg6[%c0_5, %c0_6] : memref<8x16xf32, #tpu.memory_space<vmem>>, vector<8x16xf32>
    %cst_7 = arith.constant 5.000000e-01 : f32
    %10 = vector.broadcast %cst_7 : f32 to vector<8x16xf32>
    %11 = arith.mulf %10, %8 : vector<8x16xf32>
    %12 = math.exp %11 : vector<8x16xf32>
    %13 = arith.mulf %9, %12 : vector<8x16xf32>
    %14 = arith.addf %7, %13 : vector<8x16xf32>
    %15 = arith.truncf %14 : vector<8x16xf32> to vector<8x16xbf16>
    %c0_8 = arith.constant 0 : index
    %c0_9 = arith.constant 0 : index
    %16 = vector.load %arg4[%c0_8, %c0_9] : memref<16x32xbf16, #tpu.memory_space<vmem>>, vector<16x32xbf16>
    %cst_10 = arith.constant dense<0.000000e+00> : vector<8x32xf32>
    %17 = tpu.matmul %15, %16, %cst_10 {dimension_numbers = #tpu.dot_dimension_numbers<[1], [0], [0], [1], [0, 0, 1, 1], [], []>} : vector<8x16xbf16>, vector<16x32xbf16>, vector<8x32xf32> -> vector<8x32xf32>
    %c0_11 = arith.constant 0 : index
    %c0_12 = arith.constant 0 : index
    %18 = vector.load %arg5[%c0_11, %c0_12] : memref<1x32xf32, #tpu.memory_space<vmem>>, vector<1x32xf32>
    %19 = vector.broadcast %18 : vector<1x32xf32> to vector<8x32xf32>
    %20 = arith.addf %17, %19 : vector<8x32xf32>
    %cst_13 = arith.constant 0.000000e+00 : f32
    %21 = vector.broadcast %cst_13 : f32 to vector<8x32xf32>
    %22 = arith.subf %21, %20 : vector<8x32xf32>
    %23 = math.exp %22 : vector<8x32xf32>
    %cst_14 = arith.constant 1.000000e+00 : f32
    %24 = vector.broadcast %cst_14 : f32 to vector<8x32xf32>
    %25 = arith.addf %24, %23 : vector<8x32xf32>
    %26 = tpu.reciprocal %25 {approx = true} : vector<8x32xf32> -> vector<8x32xf32>
    %27 = tpu.concatenate %26, %6 in 1 : vector<8x32xf32>, vector<8x32xf32> -> vector<8x64xf32>
    %c0_15 = arith.constant 0 : index
    %c0_16 = arith.constant 0 : index
    %28 = vector.load %arg7[%c0_15, %c0_16] : memref<8x64xf32, #tpu.memory_space<vmem>>, vector<8x64xf32>
    tpu.vector_store %arg7[%c0_15, %c0_16], %27 {strides = array<i32>} : memref<8x64xf32, #tpu.memory_space<vmem>>, vector<8x64xf32>,
    return
  }
  func.func @transform_0(%arg0: i32) -> (i32, i32) {
    %c0_i32 = arith.constant 0 : i32
    %c0_i32_0 = arith.constant 0 : i32
    return %arg0, %c0_i32 : i32, i32
  }
  func.func @transform_1(%arg0: i32) -> (i32, i32) {
    %c0_i32 = arith.constant 0 : i32
    %c0_i32_0 = arith.constant 0 : i32
    %c0_i32_1 = arith.constant 0 : i32
    return %c0_i32, %c0_i32_0 : i32, i32
  }
  func.func @transform_2(%arg0: i32) -> (i32, i32) {
    %c0_i32 = arith.constant 0 : i32
    %c0_i32_0 = arith.constant 0 : i32
    %c0_i32_1 = arith.constant 0 : i32
    return %c0_i32, %c0_i32_0 : i32, i32
  }
  func.func @transform_3(%arg0: i32) -> (i32, i32) {
    %c0_i32 = arith.constant 0 : i32
    %c0_i32_0 = arith.constant 0 : i32
    %c0_i32_1 = arith.constant 0 : i32
    return %c0_i32, %c0_i32_0 : i32, i32
  }
  func.func @transform_4(%arg0: i32) -> (i32, i32) {
    %c0_i32 = arith.constant 0 : i32
    %c0_i32_0 = arith.constant 0 : i32
    %c0_i32_1 = arith.constant 0 : i32
    return %c0_i32, %c0_i32_0 : i32, i32
  }
  func.func @transform_5(%arg0: i32) -> (i32, i32) {
    %c0_i32 = arith.constant 0 : i32
    %c0_i32_0 = arith.constant 0 : i32
    return %arg0, %c0_i32 : i32, i32
  }
  func.func @transform_6(%arg0: i32) -> (i32, i32) {
    %c0_i32 = arith.constant 0 : i32
    %c0_i32_0 = arith.constant 0 : i32
    return %arg0, %c0_i32 : i32, i32
  }
}

</mosaic_0001>

<bundles_post_ra>
// kernel: tpu_custom_call.1
= control target key start
LH: loop header
LB: loop body
LE: loop exit
PB: predicated region body
PF: predicated region fallthrough
CT: control target
= control target key end

     0   :  { %11 = vsyncpa [#allocation3], 0  ;;  %s423_s0 = inlined_call_operand.hbm [shape: f32[8,32], index: 0, kind: input, shape index: {}]   ;;  %s424_s1 = inlined_call_operand.hbm [shape: bf16[32,32], index: 1, kind: input, shape index: {}]   ;;  %s425_s2 = inlined_call_operand.vmem [shape: f32[1,32], index: 2, kind: input, shape index: {}]   ;;  %s426_s3 = inlined_call_operand.hbm [shape: bf16[16,32], index: 3, kind: input, shape index: {}]   ;;  %s427_s4 = inlined_call_operand.vmem [shape: f32[1,32], index: 4, kind: input, shape index: {}]   ;;  %s428_s5 = inlined_call_operand.hbm [shape: f32[8,16], index: 5, kind: input, shape index: {}]   ;;  %s429_s6 = inlined_call_operand.hbm [shape: f32[8,64], index: 6, kind: output, shape index: {}]  }
   0x1   :  { %12 = vsyncpa [#allocation6], 0 }
   0x2   :  { %13 = vsyncpa [#allocation9], 0  ;;  %s30_s23 = sshll.u32 %s424_s1, 4  ;;  %s31_s23 = int_to_ptr.hbm [resolvable:$true] %s30_s23 }
   0x3   :  { %14 = vsyncpa [#allocation4], 0  ;;  %s356_s24 = smov [#allocation5]   ;;  %s20_s28 = sshll.u32 %s423_s0, 4  ;;  %s21_s28 = int_to_ptr.hbm [resolvable:$true] %s20_s28 }
   0x4   :  { %s32_s25 = sshll.u32 %s356_s24, 4  ;;  %s357_s29 = smov 64   ;;  %s33_s25 = int_to_ptr.vmem [resolvable:$true] %s32_s25 }
   0x5   :  { %s358_s30 = smov 4   ;;  %s359_s7 = smov [#allocation2]  }
   0x6   :  { %38 = dma.hbm_to_vmem [thread:$0]  %s31_s23, 256, %s33_s25, [#allocation6], %s357_s29, %s357_s29, %s358_s30  }
   0x7   :  { %s22_s8 = sshll.u32 %s359_s7, 4  ;;  %s45_s11 = sshll.u32 %s426_s3, 4  ;;  %s23_s8 = int_to_ptr.vmem [resolvable:$true] %s22_s8  ;;  %s46_s11 = int_to_ptr.hbm [resolvable:$true] %s45_s11 }
   0x8   :  { %25 = dma.hbm_to_vmem [thread:$0]  %s21_s28, 128, %s23_s8, [#allocation3]  }
   0x9   :  { %s61_s13 = sshll.u32 %s428_s5, 4  ;;  %s360_s14 = smov [#allocation7]   ;;  %s62_s13 = int_to_ptr.hbm [resolvable:$true] %s61_s13 }
   0xa   :  { %s47_s15 = sshll.u32 %s360_s14, 4  ;;  %s361_s0 = smov [#allocation8]   ;;  %s48_s15 = int_to_ptr.vmem [resolvable:$true] %s47_s15 }
   0xb   :  { %53 = dma.hbm_to_vmem [thread:$0]  %s46_s11, 128, %s48_s15, [#allocation6], %s357_s29, %s357_s29, %s358_s30  }
   0xc   :  { %s63_s16 = sshll.u32 %s361_s0, 4  ;;  %s64_s16 = int_to_ptr.vmem [resolvable:$true] %s63_s16 }
   0xd   :  { %66 = dma.hbm_to_vmem [thread:$0]  %s62_s13, 128, %s64_s16, [#allocation9]  }
   0xe   :  { %348 = dma.done.wait [#allocation3], 128  }
   0xf   :  { %349 = vsyncadd [#allocation3], 4294967168 }
  0x10   :  { %350 = dma.done.wait [#allocation6], 384  }
  0x11   :  { %351 = vsyncadd [#allocation6], 4294966912 }
  0x12   :  { %352 = dma.done.wait [#allocation9], 128  }
  0x13   :  { %353 = vsyncadd [#allocation9], 4294967168  ;;  %v209_v0 = vld [vmem:[#allocation5 + $0x8] sm:$0xff]  ;;  %v208_v1 = vld [vmem:[#allocation5] sm:$0xff]  ;;  %vm106_vm0 = vcmask 261120   ;;  %s362_s17 = smov 112  }
  0x14   :  { %116 = vmatpush.bf16.msra.mxu0 %v209_v0  ;;  %v84_v2 = vld [vmem:[#allocation2] sm:$0xff]  ;;  %s363_s18 = smov 32   ;;  %v210_v11 = vld [vmem:[#allocation7] sm:$0xff]  ;;  %vm146_vm1 = vcmask 130048   ;;  %s364_s20 = smov [#allocation10]   ;;  %vm173_vm2 = vcmask 523264  }
  0x15   :  { %v85_v3 = vpack.c.bf16 %v84_v2, %v84_v2  ;;  %v220_v4 = vld [vmem:[%s425_s2] ss:$0 sm:$0xff]  ;;  %157 = vmatpush.bf16.msra.mxu1 %v210_v11  ;;  %s180_s21 = sshll.u32 %s364_s20, 4  ;;  %s182_s24 = sshll.u32 %s429_s6, 4  ;;  %s181_s21 = int_to_ptr.vmem [resolvable:$true] %s180_s21  ;;  %s183_s24 = int_to_ptr.hbm [resolvable:$true] %s182_s24 }
  0x16   :  { %v123_v12 = vld [vmem:[#allocation8] sm:$0xff] }
  0x17   :  { %v221_v17 = vld [vmem:[%s427_s4] ss:$0 sm:$0xff] }
  0x18   :  { %117 = vmatpush.bf16.msra.mxu0 %v208_v1 }
  0x1b   :  { %202 = vmatmul.msk.bf16.vlgmr.msra.gmra.mxu0 %vm106_vm0, %v85_v3 }
  0x98   :  { %v119_v5 = vpop.f32.mrf.mxu0 }
  0x99   :  { %v120_v6 = vadd.f32 %v220_v4, %v119_v5 }
  0x9b   :  { %v124_v7 = vmul.f32 0.5, %v120_v6 }
  0x9d   :  { %v125_v8 = vmul.f32 1.442695, %v124_v7 }
  0x9f   :  { %222 = vpow2.f32 %v125_v8 }
  0xa0   :  { %v121_v9 = vpop.f32.mrf.mxu0 }
  0xa5   :  { %v223_v10 = vpop.eup %222 }
  0xa6   :  { %128 = vrot.lane.b32.xlu0 %v223_v10, %s362_s17 }
  0xae   :  { %169 = vrot.lane.b32.xlu0 %v120_v6, %s363_s18 }
 0x118   :  { %v129_v13 = vpop.permute.xlu0 %128 }
 0x119   :  { %v131_v14 = vmul.f32 %v129_v13, %v123_v12 }
 0x11b   :  { %v132_v15 = vadd.f32 %v131_v14, %v120_v6 }
 0x11d   :  { %v133_v16 = vpack.c.bf16 %v132_v15, %v132_v15 }
 0x11f   :  { %207 = vmatmul.msk.bf16.vlgmr.msra.gmra.mxu1 %vm146_vm1, %v133_v16 }
 0x120   :  { %v170_v26 = vpop.permute.xlu0 %169 }
 0x19c   :  { %v159_v18 = vpop.f32.mrf.mxu1 }
 0x19d   :  { %v160_v19 = vadd.f32 %v221_v17, %v159_v18 }
 0x19f   :  { %v163_v20 = vsub.f32 0.0, %v160_v19 }
 0x1a1   :  { %v164_v21 = vmul.f32 1.442695, %v163_v20 }
 0x1a3   :  { %224 = vpow2.f32 %v164_v21 }
 0x1a4   :  { %v161_v22 = vpop.f32.mrf.mxu1 }
 0x1a9   :  { %v225_v23 = vpop.eup %224 }
 0x1aa   :  { %v166_v24 = vadd.f32 1.0, %v225_v23 }
 0x1ac   :  { %226 = vrcp.f32 %v166_v24 }
 0x1b2   :  { %v227_v25 = vpop.eup %226 }
 0x1b3   :  { %v172_v27 = vsel %vm106_vm0, %v227_v25, %v170_v26 }
 0x1b4   :  { %174 = vst.msk [vmem:[#allocation10] sm:$0xff] %vm173_vm2, %v172_v27 }
 0x1b5   :  { %185 = dma.vmem_to_hbm [thread:$0]  %s181_s21, 128, %s183_s24, [#allocation4]  }
 0x1b6   :  { %354 = dma.done.wait [#allocation4], 128  }
 0x1b7   :  { %355 = vsyncadd [#allocation4], 4294967168 }
 0x1b8   :  { %190 = vsyncpa [#allocation3], 1 }
 0x1b9   :  { %191 = vsyncpa [#allocation6], 1 }
 0x1ba   :  { %192 = vsyncpa [#allocation9], 1 }
 0x1bb   :  { %193 = vsyncpa [#allocation4], 1 }

</bundles_post_ra>
